<compile_context>
chip_gen: v7x
topology: tpu7x:2x2x1
jax: 0.10.0
libtpu: 0.0.40
codegen_flags: <defaults>
</compile_context>

<pallas_src>
import jax
import jax.numpy as jnp
from jax.experimental import pallas as pl
from jax.experimental.pallas import tpu as pltpu

_MAX_TILE_BYTES = 2 << 20          # per input stream, per pipeline buffer
_SPLIT_THRESHOLD_BYTES = 512 << 10  # only split across cores above this size


def _round_up(x, m):
    return ((x + m - 1) // m) * m


def _rsample_kernel(mu_ref, log_sigma_ref, eps_ref, out_ref):
    ls = log_sigma_ref[...]
    # Stable, branch-free softplus: softplus(x) = max(x, 0) + log1p(exp(-|x|)).
    sigma = jnp.maximum(ls, 0.0) + jnp.log1p(jnp.exp(-jnp.abs(ls)))
    out_ref[...] = mu_ref[...] + sigma * eps_ref[...]


def variational_rsample(mu, log_sigma, key, *, max_tile_rows=None):
    """Forward pass of VariationalDist: mu + softplus(log_sigma) * eps."""
    assert mu.shape == log_sigma.shape, "mu / log_sigma shape mismatch"

    # eps ~ N(0, 1), same shape/dtype as the parameters (torch rsample semantics).
    eps = jax.random.normal(key, mu.shape, dtype=mu.dtype)

    orig_shape = mu.shape
    cols = orig_shape[-1] if mu.ndim >= 1 else 1
    rows = max(1, mu.size // max(1, cols))

    # Contiguous row-major reshape: metadata only, no HBM copy.
    mu2 = mu.reshape(rows, cols)
    ls2 = log_sigma.reshape(rows, cols)
    eps2 = eps.reshape(rows, cols)

    itemsize = jnp.dtype(mu.dtype).itemsize
    # Largest row-tile (multiple of 8) that keeps each stream under the budget.
    vmem_rows = max(8, (_MAX_TILE_BYTES // max(1, cols * itemsize)) // 8 * 8)
    if max_tile_rows is not None:
        vmem_rows = min(vmem_rows, max(8, _round_up(max_tile_rows, 8)))

    if rows <= vmem_rows:
        if rows >= 16 and rows * cols * itemsize > _SPLIT_THRESHOLD_BYTES:
            # Give the "parallel" grid axis >= 2 steps so both v7x TCs get work.
            tile_rows = _round_up(pl.cdiv(rows, 2), 8)
        else:
            tile_rows = rows  # single full-extent block (no (8,128) constraint)
    else:
        tile_rows = vmem_rows

    grid = (pl.cdiv(rows, tile_rows),)
    block = pl.BlockSpec((tile_rows, cols), lambda i: (i, 0))

    out2 = pl.pallas_call(
        _rsample_kernel,
        out_shape=jax.ShapeDtypeStruct((rows, cols), mu.dtype),
        grid_spec=pltpu.PrefetchScalarGridSpec(
            num_scalar_prefetch=0,
            grid=grid,
            in_specs=[block, block, block],
            out_specs=block,
        ),
        compiler_params=pltpu.CompilerParams(
            dimension_semantics=("parallel",)),
    )(mu2, ls2, eps2)

    return out2.reshape(orig_shape)


if __name__ == "__main__":
    dtype = jnp.float32
    root = jax.random.PRNGKey(0)
    k1, k2, k3 = jax.random.split(root, 3)

    # --- 1. Module-consistent shape & init: batch_shape=4, num_inducing_points=32,
    #        mu = zeros, log_sigma = ones (exactly as VariationalDist.__init__).
    D, N = 4, 32
    mu = jnp.zeros((D, N), dtype)
    log_sigma = jnp.ones((D, N), dtype)

    out = jax.block_until_ready(variational_rsample(mu, log_sigma, k1))
    assert out.shape == (D, N) and out.dtype == dtype
    assert bool(jnp.all(jnp.isfinite(out)))

    # Exact reference with the same eps draw.
    eps_ref = jax.random.normal(k1, (D, N), dtype)
    ref = mu + jax.nn.softplus(log_sigma) * eps_ref
    assert bool(jnp.max(jnp.abs(out - ref)) < 1e-5), "mismatch vs reference"

    # Deterministic for a fixed key; different keys give different draws.
    out_again = jax.block_until_ready(variational_rsample(mu, log_sigma, k1))
    assert bool(jnp.array_equal(out, out_again))
    out_other = jax.block_until_ready(variational_rsample(mu, log_sigma, k2))
    assert not bool(jnp.array_equal(out, out_other))

    # --- 2. Exercise the tiled grid + masked partial edge block on a small shape
    #        (rows=20 with 8-row tiles -> 3 grid steps, last block is 4 rows).
    D2, N2 = 20, 128
    mu_b = jax.random.normal(k2, (D2, N2), dtype) * 2.0
    ls_b = jax.random.uniform(k3, (D2, N2), dtype, minval=-3.0, maxval=3.0)
    out_b = jax.block_until_ready(
        variational_rsample(mu_b, ls_b, k3, max_tile_rows=8))
    eps_b = jax.random.normal(k3, (D2, N2), dtype)
    ref_b = mu_b + jax.nn.softplus(ls_b) * eps_b
    assert out_b.shape == (D2, N2)
    assert bool(jnp.all(jnp.isfinite(out_b)))
    assert bool(jnp.max(jnp.abs(out_b - ref_b)) < 1e-5), "tiled path mismatch"

    print("KERNEL_OK")
</pallas_src>

<mosaic_0001>
module attributes {stable_mosaic.version = 11 : i64} {
  func.func @_rsample_kernel(%arg0: i32, %arg1: memref<4x32xf32, #tpu.memory_space<vmem>>, %arg2: memref<4x32xf32, #tpu.memory_space<vmem>>, %arg3: memref<4x32xf32, #tpu.memory_space<vmem>>, %arg4: memref<4x32xf32, #tpu.memory_space<vmem>>) attributes {dimension_semantics = [#tpu.dimension_semantics<parallel>], iteration_bounds = array<i64: 1>, scalar_prefetch = 0 : i64, scratch_operands = 0 : i64, tpu.core_type = #tpu.core_type<tc>, window_params = [{transform_indices = @transform_0, window_bounds = array<i64: 4, 32>}, {transform_indices = @transform_1, window_bounds = array<i64: 4, 32>}, {transform_indices = @transform_2, window_bounds = array<i64: 4, 32>}, {transform_indices = @transform_3, window_bounds = array<i64: 4, 32>}]} {
    %c0 = arith.constant 0 : index
    %c0_0 = arith.constant 0 : index
    %0 = vector.load %arg2[%c0, %c0_0] : memref<4x32xf32, #tpu.memory_space<vmem>>, vector<4x32xf32>
    %cst = arith.constant 0.000000e+00 : f32
    %1 = vector.broadcast %cst : f32 to vector<4x32xf32>
    %2 = arith.maximumf %0, %1 : vector<4x32xf32>
    %3 = math.absf %0 : vector<4x32xf32>
    %cst_1 = arith.constant 0.000000e+00 : f32
    %4 = vector.broadcast %cst_1 : f32 to vector<4x32xf32>
    %5 = arith.subf %4, %3 : vector<4x32xf32>
    %6 = math.exp %5 : vector<4x32xf32>
    %7 = math.log1p %6 : vector<4x32xf32>
    %8 = arith.addf %2, %7 : vector<4x32xf32>
    %c0_2 = arith.constant 0 : index
    %c0_3 = arith.constant 0 : index
    %9 = vector.load %arg1[%c0_2, %c0_3] : memref<4x32xf32, #tpu.memory_space<vmem>>, vector<4x32xf32>
    %c0_4 = arith.constant 0 : index
    %c0_5 = arith.constant 0 : index
    %10 = vector.load %arg3[%c0_4, %c0_5] : memref<4x32xf32, #tpu.memory_space<vmem>>, vector<4x32xf32>
    %11 = arith.mulf %8, %10 : vector<4x32xf32>
    %12 = arith.addf %9, %11 : vector<4x32xf32>
    %c0_6 = arith.constant 0 : index
    %c0_7 = arith.constant 0 : index
    %13 = vector.load %arg4[%c0_6, %c0_7] : memref<4x32xf32, #tpu.memory_space<vmem>>, vector<4x32xf32>
    tpu.vector_store %arg4[%c0_6, %c0_7], %12 {strides = array<i32>} : memref<4x32xf32, #tpu.memory_space<vmem>>, vector<4x32xf32>,
    return
  }
  func.func @transform_0(%arg0: i32) -> (i32, i32) {
    %c0_i32 = arith.constant 0 : i32
    %c0_i32_0 = arith.constant 0 : i32
    return %arg0, %c0_i32 : i32, i32
  }
  func.func @transform_1(%arg0: i32) -> (i32, i32) {
    %c0_i32 = arith.constant 0 : i32
    %c0_i32_0 = arith.constant 0 : i32
    return %arg0, %c0_i32 : i32, i32
  }
  func.func @transform_2(%arg0: i32) -> (i32, i32) {
    %c0_i32 = arith.constant 0 : i32
    %c0_i32_0 = arith.constant 0 : i32
    return %arg0, %c0_i32 : i32, i32
  }
  func.func @transform_3(%arg0: i32) -> (i32, i32) {
    %c0_i32 = arith.constant 0 : i32
    %c0_i32_0 = arith.constant 0 : i32
    return %arg0, %c0_i32 : i32, i32
  }
}

</mosaic_0001>

<bundles_post_ra>
// kernel: tpu_custom_call.1
= control target key start
LH: loop header
LB: loop body
LE: loop exit
PB: predicated region body
PF: predicated region fallthrough
CT: control target
= control target key end

     0   :  { %8 = vsyncpa [#allocation3], 0  ;;  %s218_s0 = inlined_call_operand.hbm [shape: f32[4,32], index: 0, kind: input, shape index: {}]   ;;  %s219_s1 = inlined_call_operand.hbm [shape: f32[4,32], index: 1, kind: input, shape index: {}]   ;;  %s220_s2 = inlined_call_operand.vmem [shape: f32[4,32], index: 2, kind: input, shape index: {}]   ;;  %s221_s3 = inlined_call_operand.hbm [shape: f32[4,32], index: 3, kind: output, shape index: {}]  }
   0x1   :  { %9 = vsyncpa [#allocation6], 0 }
   0x2   :  { %10 = vsyncpa [#allocation4], 0  ;;  %s156_s12 = smov [#allocation2]   ;;  %s157_s14 = smov [#allocation5]  }
   0x3   :  { %s17_s13 = sshll.u32 %s156_s12, 4  ;;  %s27_s15 = sshll.u32 %s157_s14, 4  ;;  %s18_s13 = int_to_ptr.vmem [resolvable:$true] %s17_s13  ;;  %s28_s15 = int_to_ptr.vmem [resolvable:$true] %s27_s15 }
   0x4   :  { %s84_s18 = scalar_lea.hbm %s218_s0, 64 }
   0x5   :  { %p85_p0 = scmp.ne.s32.totalorder %s218_s0, %s84_s18  ;;  %p88_p1 = scmp.lt.u32.totalorder %s84_s18, %s218_s0 }
   0x7   :  { %p90_p2 = pnand %p88_p1, %p85_p0 }
   0x9   :  { %93 = shalt.err (!%p90_p2)
}
   0xa   :  { %s94_s23 = scalar_lea.vmem %s18_s13, 64  ;;  %p99_p4 = scmp.lt.s32.totalorder %s18_s13, %s18_s13 }
   0xb   :  { %p95_p3 = scmp.ne.s32.totalorder %s18_s13, %s94_s23  ;;  %p100_p5 = scmp.lt.s32.totalorder %s94_s23, %s94_s23 }
   0xd   :  { %p101_p6 = por %p100_p5, %p99_p4 }
   0xf   :  { %p102_p7 = pnand %p101_p6, %p95_p3 }
  0x11   :  { %105 = shalt.err (!%p102_p7)
}
  0x12   :  { %20 = dma.hbm_to_vmem [thread:$0]  %s218_s0, 64, %s18_s13, [#allocation3]  }
  0x13   :  { %s106_s28 = scalar_lea.hbm %s219_s1, 64 }
  0x14   :  { %p107_p8 = scmp.ne.s32.totalorder %s219_s1, %s106_s28  ;;  %p110_p9 = scmp.lt.u32.totalorder %s106_s28, %s219_s1 }
  0x16   :  { %p112_p10 = pnand %p110_p9, %p107_p8 }
  0x18   :  { %115 = shalt.err (!%p112_p10)
}
  0x19   :  { %s116_s6 = scalar_lea.vmem %s28_s15, 64  ;;  %p121_p12 = scmp.lt.s32.totalorder %s28_s15, %s28_s15 }
  0x1a   :  { %p117_p11 = scmp.ne.s32.totalorder %s28_s15, %s116_s6  ;;  %p122_p13 = scmp.lt.s32.totalorder %s116_s6, %s116_s6 }
  0x1c   :  { %p123_p0 = por %p122_p13, %p121_p12 }
  0x1e   :  { %p124_p1 = pnand %p123_p0, %p117_p11 }
  0x20   :  { %127 = shalt.err (!%p124_p1)
}
  0x21   :  { %30 = dma.hbm_to_vmem [thread:$0]  %s219_s1, 64, %s28_s15, [#allocation6]  }
  0x22   :  { %150 = dma.done.wait [#allocation3], 64  }
  0x23   :  { %151 = vsyncadd [#allocation3], 4294967232 }
  0x24   :  { %152 = dma.done.wait [#allocation6], 64  }
  0x25   :  { %153 = vsyncadd [#allocation6], 4294967232  ;;  %v39_v0 = vld [vmem:[#allocation5] sm:$0xf]  ;;  %v56_v14 = vld [vmem:[%s220_s2] sm:$0xf] }
  0x26   :  { %v41_v1 = vand.u32 2147483647, %v39_v0  ;;  %v40_v11 = vmax.f32 %v39_v0, 0.0  ;;  %v55_v16 = vld [vmem:[#allocation2] sm:$0xf]  ;;  %s158_s9 = smov [#allocation7]  }
  0x27   :  { %s67_s10 = sshll.u32 %s158_s9, 4  ;;  %vm59_vm1 = vcmask 257024   ;;  %s68_s10 = int_to_ptr.vmem [resolvable:$true] %s67_s10 }
  0x28   :  { %v42_v2 = vsub.f32 0.0, %v41_v1  ;;  %s128_s11 = scalar_lea.vmem %s68_s10, 64  ;;  %p133_p3 = scmp.lt.s32.totalorder %s68_s10, %s68_s10 }
  0x29   :  { %p129_p2 = scmp.ne.s32.totalorder %s68_s10, %s128_s11  ;;  %p134_p4 = scmp.lt.s32.totalorder %s128_s11, %s128_s11 }
  0x2a   :  { %v43_v3 = vmul.f32 1.442695, %v42_v2 }
  0x2b   :  { %p135_p5 = por %p134_p4, %p133_p3 }
  0x2c   :  { %80 = vpow2.f32 %v43_v3 }
  0x2d   :  { %p136_p6 = pnand %p135_p5, %p129_p2 }
  0x36   :  { %v81_v4 = vpop.eup %80 }
  0x37   :  { %v45_v5 = vadd.f32 1.0, %v81_v4  ;;  %v48_v6 = vmul.f32 -0.5, %v81_v4  ;;  %v51_v8 = vand.u32 2147483647, %v81_v4 }
  0x39   :  { %82 = vlog2.f32 %v45_v5  ;;  %v49_v7 = vadd.f32 1.0, %v48_v6  ;;  %vm52_vm0 = vcmp.lt.f32.partialorder %v51_v8, 0.0004427343 }
  0x3b   :  { %v50_v9 = vmul.f32 %v81_v4, %v49_v7 }
  0x43   :  { %v83_v10 = vpop.eup %82 }
  0x44   :  { %v47_v12 = vmul.f32 0.6931472, %v83_v10 }
  0x46   :  { %v53_v13 = vsel %vm52_vm0, %v50_v9, %v47_v12 }
  0x47   :  { %v54_v15 = vadd.f32 %v53_v13, %v40_v11 }
  0x49   :  { %v57_v17 = vmul.f32 %v56_v14, %v54_v15 }
  0x4b   :  { %v58_v18 = vadd.f32 %v57_v17, %v55_v16 }
  0x4d   :  { %60 = vst.msk [vmem:[#allocation7] sm:$0xf] %vm59_vm1, %v58_v18 }
  0x4e   :  { %139 = shalt.err (!%p136_p6)
}
  0x4f   :  { %s140_s2 = scalar_lea.hbm %s221_s3, 64 }
  0x50   :  { %p141_p7 = scmp.ne.s32.totalorder %s221_s3, %s140_s2  ;;  %p144_p8 = scmp.lt.u32.totalorder %s140_s2, %s221_s3 }
  0x52   :  { %p146_p9 = pnand %p144_p8, %p141_p7 }
  0x54   :  { %149 = shalt.err (!%p146_p9)
}
  0x55   :  { %70 = dma.vmem_to_hbm [thread:$0]  %s68_s10, 64, %s221_s3, [#allocation4]  }
  0x56   :  { %154 = dma.done.wait [#allocation4], 64  }
  0x57   :  { %155 = vsyncadd [#allocation4], 4294967232 }
  0x58   :  { %74 = vsyncpa [#allocation3], 1 }
  0x59   :  { %75 = vsyncpa [#allocation6], 1 }
  0x5a   :  { %76 = vsyncpa [#allocation4], 1 }

</bundles_post_ra>
